<compile_context>
chip_gen: v6e
topology: v6e:2x2x1
jax: 0.10.0
libtpu: 0.0.40
codegen_flags: <defaults>
</compile_context>

<pallas_src>
import functools

import jax
import jax.numpy as jnp
from jax import lax
from jax.experimental import pallas as pl
from jax.experimental.pallas import tpu as pltpu


def _contrast_loss_kernel(a_ref, ct_ref, cls_row_ref, cls_col_ref, cnt_ref,
                          loss_ref, *, inv_temperature, scale):
    # a_ref       : [TM, Dp]  anchor feature tile (native dtype)
    # ct_ref      : [Dp, N]   pre-transposed contrast features (VMEM-resident)
    # cls_row_ref : [TM, 1]   int32 class ids of the anchor rows
    # cls_col_ref : [1,  N]   int32 class ids of all contrast rows
    # cnt_ref     : [TM, 1]   f32 positive count per anchor (self excluded)
    # loss_ref    : [TM, 1]   f32 per-anchor loss
    adc = lax.dot_general(
        a_ref[...], ct_ref[...],
        dimension_numbers=(((1,), (0,)), ((), ())),
        preferred_element_type=jnp.float32)                      # [TM, N]
    tm, n = adc.shape

    # Row max over ALL columns (incl. self), as in the reference.
    row_max = jnp.max(adc, axis=1, keepdims=True)                # [TM, 1]

    # Self-contrast exclusion mask from iotas (exact; no cancellation tricks).
    row_ids = (pl.program_id(0) * tm
               + lax.broadcasted_iota(jnp.int32, (tm, n), 0))
    col_ids = lax.broadcasted_iota(jnp.int32, (tm, n), 1)
    not_self = row_ids != col_ids                                # [TM, N]

    # Denominator: masked streaming exp-sum (temperature folded into the
    # exponent; argument is always <= 0 so no overflow).
    denom = jnp.sum(
        jnp.where(not_self, jnp.exp(inv_temperature * (adc - row_max)), 0.0),
        axis=1, keepdims=True)                                   # [TM, 1]

    # Positives: same class, not self.  Sum RAW matmul outputs; the shift /
    # scale / log-denominator are applied once per row below.
    pos = jnp.logical_and(not_self, cls_row_ref[...] == cls_col_ref[...])
    pos_sum = jnp.sum(jnp.where(pos, adc, 0.0), axis=1, keepdims=True)

    cnt = cnt_ref[...]                                           # [TM, 1]
    mean_log_prob_pos = (inv_temperature
                         * (pos_sum / jnp.maximum(cnt, 1.0) - row_max)
                         - jnp.log(denom))
    # Rows with no positives -> 0 (the PyTorch reference would produce NaN).
    mean_log_prob_pos = jnp.where(cnt > 0.0, mean_log_prob_pos, 0.0)

    loss_ref[...] = (-scale) * mean_log_prob_pos


def _vmem_capacity_bytes():
    try:
        info = pltpu.get_tpu_info()
        cap = getattr(info, "vmem_capacity_bytes", None)
        if cap:
            return int(cap)
    except Exception:
        pass
    return 64 * 2 ** 20  # conservative fallback (v7x per-TensorCore)


def _vmem_estimate(tm, n, d_pad, itemsize):
    return (n * d_pad * itemsize            # resident [Dp, N] contrast block
            + 2 * tm * d_pad * itemsize     # double-buffered anchor tile
            + 3 * tm * n * 4                # logits + streaming f32 temporaries
            + 4 * (tm * 128 + 8 * n) * 4)   # padded class / count / out tiles


def _pick_tm(n, d_pad, itemsize, budget):
    cands = [t for t in (512, 256, 128, 64, 32, 16, 8) if n % t == 0]
    # Prefer >= 2 grid steps (megacore split) and the largest TM that fits.
    for tm in cands:
        if n // tm >= 2 and _vmem_estimate(tm, n, d_pad, itemsize) <= budget:
            return tm
    for tm in cands:
        if _vmem_estimate(tm, n, d_pad, itemsize) <= budget:
            return tm
    return cands[-1] if cands else n  # full block is always legal


def contrast_loss(features, labels=None, mask=None,
                  temperature=0.07, contrast_mode='all', base_temperature=0.07):
    """JAX/Pallas equivalent of ContrastLoss.forward (return_logits=False).

    features: [bsz, n_views, ...] (extra trailing dims are flattened)
    labels:   optional [bsz] int labels (SupCon); None -> SimCLR (eye mask)
    Returns:  loss of shape [anchor_count, bsz].
    Note: rows with zero positives return 0 instead of the reference's NaN.
    """
    if features.ndim < 3:
        raise ValueError('`features` needs to be [bsz, n_views, ...]')
    if features.ndim > 3:
        features = features.reshape(features.shape[0], features.shape[1], -1)
    bsz, n_views, dim = features.shape

    if labels is not None and mask is not None:
        raise ValueError('Cannot define both `labels` and `mask`')
    if mask is not None:
        # TODO(synk): arbitrary/asymmetric [bsz, bsz] masks need an explicit
        # [N, N] mask input path; not implemented in the iota/label kernel.
        raise NotImplementedError("explicit `mask` not supported")
    if labels is None:
        cls = jnp.arange(bsz, dtype=jnp.int32)
    else:
        labels = jnp.asarray(labels).reshape(-1)
        if labels.shape[0] != bsz:
            raise ValueError('Num of labels does not match num of features')
        cls = labels.astype(jnp.int32)

    if contrast_mode == 'one':
        # TODO(synk): 'one' mode uses a rectangular anchor block; only 'all'
        # is implemented in this kernel.
        raise NotImplementedError("contrast_mode='one' not implemented")
    elif contrast_mode == 'all':
        anchor_count = n_views
    else:
        raise ValueError('Unknown mode: {}'.format(contrast_mode))

    N = n_views * bsz
    # contrast_feature = cat(unbind(features, dim=1), dim=0) -> view-major [N, D]
    cf = jnp.transpose(features, (1, 0, 2)).reshape(N, dim)

    # Zero-pad feature dim to a multiple of 128 (fills MXU lanes; exact).
    d_pad = max(128, ((dim + 127) // 128) * 128)
    cf_rows = jnp.pad(cf, ((0, 0), (0, d_pad - dim))) if d_pad != dim else cf
    cf_t = jnp.transpose(cf_rows)                      # [Dp, N], canonical MXU RHS

    # Per-row class ids in view-major row order (row r -> sample r % bsz).
    cls_full = jnp.tile(cls, n_views)
    cls_row = cls_full.reshape(N, 1)
    cls_col = cls_full.reshape(1, N)

    # Positive counts (self excluded) hoisted out of the kernel (bsz x bsz only).
    if labels is None:
        same_per_sample = jnp.ones((bsz,), jnp.float32)
    else:
        same_per_sample = jnp.sum(
            (cls[:, None] == cls[None, :]).astype(jnp.float32), axis=1)
    pos_cnt = jnp.tile(n_views * same_per_sample - 1.0, n_views).reshape(N, 1)

    # TODO(synk): optionally cast f32 features to bf16 here (halves resident
    # block + DMA, full-rate MXU on v5e); kept in caller dtype for exactness.
    itemsize = jnp.dtype(cf_rows.dtype).itemsize
    budget = int(0.85 * _vmem_capacity_bytes())
    tm = _pick_tm(N, d_pad, itemsize, budget)
    grid = (N // tm,)
    vmem_limit = int(min(budget,
                         max(2 * _vmem_estimate(tm, N, d_pad, itemsize),
                             32 * 2 ** 20)))

    kernel = functools.partial(
        _contrast_loss_kernel,
        inv_temperature=float(1.0 / temperature),
        scale=float(temperature / base_temperature),
    )

    def _run(single_buffer_resident):
        def const_spec(block_shape):
            if single_buffer_resident:
                return pl.BlockSpec(block_shape, lambda i: (0, 0),
                                    pipeline_mode=pl.Buffered(1))
            return pl.BlockSpec(block_shape, lambda i: (0, 0))

        return pl.pallas_call(
            kernel,
            out_shape=jax.ShapeDtypeStruct((N, 1), jnp.float32),
            grid=grid,
            in_specs=[
                pl.BlockSpec((tm, d_pad), lambda i: (i, 0)),   # anchor row tile
                const_spec((d_pad, N)),                        # resident contrast
                pl.BlockSpec((tm, 1), lambda i: (i, 0)),       # anchor class ids
                const_spec((1, N)),                            # contrast class ids
                pl.BlockSpec((tm, 1), lambda i: (i, 0)),       # positive counts
            ],
            out_specs=pl.BlockSpec((tm, 1), lambda i: (i, 0)),
            compiler_params=pltpu.CompilerParams(
                dimension_semantics=("parallel",),
                vmem_limit_bytes=vmem_limit,
            ),
        )(cf_rows, cf_t, cls_row, cls_col, pos_cnt)

    try:
        loss_col = _run(True)
    except Exception:
        # Fallback for Pallas versions without pipeline_mode / Buffered(1).
        loss_col = _run(False)

    return loss_col.reshape(anchor_count, bsz)


def _reference_contrast_loss(features, labels=None,
                             temperature=0.07, base_temperature=0.07):
    """Pure-JAX reference mirroring the PyTorch code (mode='all')."""
    bsz, n_views, dim = features.shape
    if labels is None:
        base_mask = jnp.eye(bsz, dtype=jnp.float32)
    else:
        l = jnp.asarray(labels).reshape(-1, 1)
        base_mask = (l == l.T).astype(jnp.float32)
    cf = jnp.transpose(features, (1, 0, 2)).reshape(n_views * bsz, dim)
    adc = jnp.matmul(cf, cf.T, precision=lax.Precision.HIGHEST) / temperature
    logits = adc - jnp.max(adc, axis=1, keepdims=True)
    N = n_views * bsz
    m = jnp.tile(base_mask, (n_views, n_views))
    lm = 1.0 - jnp.eye(N, dtype=jnp.float32)
    m = m * lm
    exp_logits = jnp.exp(logits) * lm
    log_prob = logits - jnp.log(exp_logits.sum(1, keepdims=True))
    mean_log_prob_pos = (m * log_prob).sum(1) / m.sum(1)
    loss = -(temperature / base_temperature) * mean_log_prob_pos
    return loss.reshape(n_views, bsz)


if __name__ == "__main__":
    key = jax.random.PRNGKey(0)
    bsz, n_views, hidden = 8, 2, 32
    features = jax.random.normal(key, (bsz, n_views, hidden), dtype=jnp.float32)
    # Normalize (typical SupCon usage), then snap values to the bf16 grid so
    # that any bf16 MXU pass introduces no operand rounding -> the kernel and
    # reference matmuls agree regardless of hardware precision path.
    features = features / jnp.linalg.norm(features, axis=-1, keepdims=True)
    features = features.astype(jnp.bfloat16).astype(jnp.float32)

    # SimCLR (labels=None) path.
    loss = contrast_loss(features)
    loss = jax.block_until_ready(loss)
    ref = _reference_contrast_loss(features)
    assert loss.shape == (n_views, bsz)
    assert jnp.allclose(loss, ref, atol=1e-3, rtol=1e-3), (loss, ref)

    # SupCon (labels) path.
    labels = jnp.array([0, 0, 1, 1, 2, 2, 3, 3], dtype=jnp.int32)
    loss_l = contrast_loss(features, labels=labels)
    loss_l = jax.block_until_ready(loss_l)
    ref_l = _reference_contrast_loss(features, labels=labels)
    assert jnp.allclose(loss_l, ref_l, atol=1e-3, rtol=1e-3), (loss_l, ref_l)

    print("KERNEL_OK")
</pallas_src>

<mosaic_0001>
module attributes {stable_mosaic.version = 11 : i64} {
  func.func @_contrast_loss_kernel(%arg0: i32, %arg1: memref<8x128xf32, #tpu.memory_space<vmem>>, %arg2: memref<128x16xf32, #tpu.memory_space<vmem>>, %arg3: memref<8x1xi32, #tpu.memory_space<vmem>>, %arg4: memref<1x16xi32, #tpu.memory_space<vmem>>, %arg5: memref<8x1xf32, #tpu.memory_space<vmem>>, %arg6: memref<8x1xf32, #tpu.memory_space<vmem>>) attributes {dimension_semantics = [#tpu.dimension_semantics<parallel>], iteration_bounds = array<i64: 2>, scalar_prefetch = 0 : i64, scratch_operands = 0 : i64, tpu.core_type = #tpu.core_type<tc>, window_params = [{transform_indices = @transform_0, window_bounds = array<i64: 8, 128>}, {pipeline_mode = #tpu.pipeline_mode<synchronous>, transform_indices = @transform_1, window_bounds = array<i64: 128, 16>}, {transform_indices = @transform_2, window_bounds = array<i64: 8, 1>}, {pipeline_mode = #tpu.pipeline_mode<synchronous>, transform_indices = @transform_3, window_bounds = array<i64: 1, 16>}, {transform_indices = @transform_4, window_bounds = array<i64: 8, 1>}, {transform_indices = @transform_5, window_bounds = array<i64: 8, 1>}]} {
    %c0 = arith.constant 0 : index
    %c0_0 = arith.constant 0 : index
    %0 = vector.load %arg1[%c0, %c0_0] : memref<8x128xf32, #tpu.memory_space<vmem>>, vector<8x128xf32>
    %c0_1 = arith.constant 0 : index
    %c0_2 = arith.constant 0 : index
    %1 = vector.load %arg2[%c0_1, %c0_2] : memref<128x16xf32, #tpu.memory_space<vmem>>, vector<128x16xf32>
    %cst = arith.constant dense<0.000000e+00> : vector<8x16xf32>
    %2 = tpu.matmul %0, %1, %cst {dimension_numbers = #tpu.dot_dimension_numbers<[1], [0], [0], [1], [0, 0, 1, 1], [], []>} : vector<8x128xf32>, vector<128x16xf32>, vector<8x16xf32> -> vector<8x16xf32>
    %cst_3 = arith.constant dense<0xFF800000> : vector<8xf32>
    %3 = vector.multi_reduction <maximumf>, %2, %cst_3 [1] : vector<8x16xf32> to vector<8xf32>
    %4 = vector.shape_cast %3 : vector<8xf32> to vector<8x1xf32>
    %c8_i32 = arith.constant 8 : i32
    %5 = arith.muli %arg0, %c8_i32 : i32
    %6 = tpu.iota {dimensions = array<i32: 0>} : vector<8x16xi32>
    %7 = vector.broadcast %5 : i32 to vector<8x16xi32>
    %8 = arith.addi %7, %6 : vector<8x16xi32>
    %9 = tpu.iota {dimensions = array<i32: 1>} : vector<8x16xi32>
    %10 = arith.cmpi ne, %8, %9 : vector<8x16xi32>
    %11 = vector.broadcast %4 : vector<8x1xf32> to vector<8x16xf32>
    %12 = arith.subf %2, %11 : vector<8x16xf32>
    %cst_4 = arith.constant 14.2857141 : f32
    %13 = vector.broadcast %cst_4 : f32 to vector<8x16xf32>
    %14 = arith.mulf %13, %12 : vector<8x16xf32>
    %15 = math.exp %14 : vector<8x16xf32>
    %cst_5 = arith.constant 0.000000e+00 : f32
    %16 = vector.broadcast %cst_5 : f32 to vector<8x16xf32>
    %17 = arith.select %10, %15, %16 : vector<8x16xi1>, vector<8x16xf32>
    %cst_6 = arith.constant dense<0.000000e+00> : vector<8xf32>
    %18 = vector.multi_reduction <add>, %17, %cst_6 [1] : vector<8x16xf32> to vector<8xf32>
    %19 = vector.shape_cast %18 : vector<8xf32> to vector<8x1xf32>
    %c0_7 = arith.constant 0 : index
    %c0_8 = arith.constant 0 : index
    %20 = vector.load %arg3[%c0_7, %c0_8] : memref<8x1xi32, #tpu.memory_space<vmem>>, vector<8x1xi32>
    %c0_9 = arith.constant 0 : index
    %c0_10 = arith.constant 0 : index
    %21 = vector.load %arg4[%c0_9, %c0_10] : memref<1x16xi32, #tpu.memory_space<vmem>>, vector<1x16xi32>
    %22 = vector.broadcast %20 : vector<8x1xi32> to vector<8x16xi32>
    %23 = vector.broadcast %21 : vector<1x16xi32> to vector<8x16xi32>
    %24 = arith.cmpi eq, %22, %23 : vector<8x16xi32>
    %25 = arith.andi %10, %24 : vector<8x16xi1>
    %cst_11 = arith.constant 0.000000e+00 : f32
    %26 = vector.broadcast %cst_11 : f32 to vector<8x16xf32>
    %27 = arith.select %25, %2, %26 : vector<8x16xi1>, vector<8x16xf32>
    %cst_12 = arith.constant dense<0.000000e+00> : vector<8xf32>
    %28 = vector.multi_reduction <add>, %27, %cst_12 [1] : vector<8x16xf32> to vector<8xf32>
    %29 = vector.shape_cast %28 : vector<8xf32> to vector<8x1xf32>
    %c0_13 = arith.constant 0 : index
    %c0_14 = arith.constant 0 : index
    %30 = vector.load %arg5[%c0_13, %c0_14] : memref<8x1xf32, #tpu.memory_space<vmem>>, vector<8x1xf32>
    %cst_15 = arith.constant 1.000000e+00 : f32
    %31 = vector.broadcast %cst_15 : f32 to vector<8x1xf32>
    %32 = arith.maximumf %30, %31 : vector<8x1xf32>
    %33 = arith.divf %29, %32 : vector<8x1xf32>
    %34 = arith.subf %33, %4 : vector<8x1xf32>
    %cst_16 = arith.constant 14.2857141 : f32
    %35 = vector.broadcast %cst_16 : f32 to vector<8x1xf32>
    %36 = arith.mulf %35, %34 : vector<8x1xf32>
    %37 = math.log %19 : vector<8x1xf32>
    %38 = arith.subf %36, %37 : vector<8x1xf32>
    %cst_17 = arith.constant 0.000000e+00 : f32
    %39 = vector.broadcast %cst_17 : f32 to vector<8x1xf32>
    %40 = arith.cmpf ogt, %30, %39 : vector<8x1xf32>
    %cst_18 = arith.constant 0.000000e+00 : f32
    %41 = vector.broadcast %cst_18 : f32 to vector<8x1xf32>
    %42 = arith.select %40, %38, %41 : vector<8x1xi1>, vector<8x1xf32>
    %cst_19 = arith.constant -1.000000e+00 : f32
    %43 = vector.broadcast %cst_19 : f32 to vector<8x1xf32>
    %44 = arith.mulf %43, %42 : vector<8x1xf32>
    %c0_20 = arith.constant 0 : index
    %c0_21 = arith.constant 0 : index
    %45 = vector.load %arg6[%c0_20, %c0_21] : memref<8x1xf32, #tpu.memory_space<vmem>>, vector<8x1xf32>
    tpu.vector_store %arg6[%c0_20, %c0_21], %44 {strides = array<i32>} : memref<8x1xf32, #tpu.memory_space<vmem>>, vector<8x1xf32>,
    return
  }
  func.func @transform_0(%arg0: i32) -> (i32, i32) {
    %c0_i32 = arith.constant 0 : i32
    %c0_i32_0 = arith.constant 0 : i32
    return %arg0, %c0_i32 : i32, i32
  }
  func.func @transform_1(%arg0: i32) -> (i32, i32) {
    %c0_i32 = arith.constant 0 : i32
    %c0_i32_0 = arith.constant 0 : i32
    %c0_i32_1 = arith.constant 0 : i32
    return %c0_i32, %c0_i32_0 : i32, i32
  }
  func.func @transform_2(%arg0: i32) -> (i32, i32) {
    %c0_i32 = arith.constant 0 : i32
    %c0_i32_0 = arith.constant 0 : i32
    return %arg0, %c0_i32 : i32, i32
  }
  func.func @transform_3(%arg0: i32) -> (i32, i32) {
    %c0_i32 = arith.constant 0 : i32
    %c0_i32_0 = arith.constant 0 : i32
    %c0_i32_1 = arith.constant 0 : i32
    return %c0_i32, %c0_i32_0 : i32, i32
  }
  func.func @transform_4(%arg0: i32) -> (i32, i32) {
    %c0_i32 = arith.constant 0 : i32
    %c0_i32_0 = arith.constant 0 : i32
    return %arg0, %c0_i32 : i32, i32
  }
  func.func @transform_5(%arg0: i32) -> (i32, i32) {
    %c0_i32 = arith.constant 0 : i32
    %c0_i32_0 = arith.constant 0 : i32
    return %arg0, %c0_i32 : i32, i32
  }
}

module attributes {stable_mosaic.version = 11 : i64} {
  func.func @_contrast_loss_kernel(%arg0: i32, %arg1: memref<8x128xf32, #tpu.memory_space<vmem>>, %arg2: memref<128x16xf32, #tpu.memory_space<vmem>>, %arg3: memref<8x1xi32, #tpu.memory_space<vmem>>, %arg4: memref<1x16xi32, #tpu.memory_space<vmem>>, %arg5: memref<8x1xf32, #tpu.memory_space<vmem>>, %arg6: memref<8x1xf32, #tpu.memory_space<vmem>>) attributes {dimension_semantics = [#tpu.dimension_semantics<parallel>], iteration_bounds = array<i64: 2>, scalar_prefetch = 0 : i64, scratch_operands = 0 : i64, tpu.core_type = #tpu.core_type<tc>, window_params = [{transform_indices = @transform_0, window_bounds = array<i64: 8, 128>}, {pipeline_mode = #tpu.pipeline_mode<synchronous>, transform_indices = @transform_1, window_bounds = array<i64: 128, 16>}, {transform_indices = @transform_2, window_bounds = array<i64: 8, 1>}, {pipeline_mode = #tpu.pipeline_mode<synchronous>, transform_indices = @transform_3, window_bounds = array<i64: 1, 16>}, {transform_indices = @transform_4, window_bounds = array<i64: 8, 1>}, {transform_indices = @transform_5, window_bounds = array<i64: 8, 1>}]} {
    %c0 = arith.constant 0 : index
    %c0_0 = arith.constant 0 : index
    %0 = vector.load %arg1[%c0, %c0_0] : memref<8x128xf32, #tpu.memory_space<vmem>>, vector<8x128xf32>
    %c0_1 = arith.constant 0 : index
    %c0_2 = arith.constant 0 : index
    %1 = vector.load %arg2[%c0_1, %c0_2] : memref<128x16xf32, #tpu.memory_space<vmem>>, vector<128x16xf32>
    %cst = arith.constant dense<0.000000e+00> : vector<8x16xf32>
    %2 = tpu.matmul %0, %1, %cst {dimension_numbers = #tpu.dot_dimension_numbers<[1], [0], [0], [1], [0, 0, 1, 1], [], []>} : vector<8x128xf32>, vector<128x16xf32>, vector<8x16xf32> -> vector<8x16xf32>
    %cst_3 = arith.constant dense<0xFF800000> : vector<8xf32>
    %3 = vector.multi_reduction <maximumf>, %2, %cst_3 [1] : vector<8x16xf32> to vector<8xf32>
    %4 = vector.shape_cast %3 : vector<8xf32> to vector<8x1xf32>
    %c8_i32 = arith.constant 8 : i32
    %5 = arith.muli %arg0, %c8_i32 : i32
    %6 = tpu.iota {dimensions = array<i32: 0>} : vector<8x16xi32>
    %7 = vector.broadcast %5 : i32 to vector<8x16xi32>
    %8 = arith.addi %7, %6 : vector<8x16xi32>
    %9 = tpu.iota {dimensions = array<i32: 1>} : vector<8x16xi32>
    %10 = arith.cmpi ne, %8, %9 : vector<8x16xi32>
    %11 = vector.broadcast %4 : vector<8x1xf32> to vector<8x16xf32>
    %12 = arith.subf %2, %11 : vector<8x16xf32>
    %cst_4 = arith.constant 14.2857141 : f32
    %13 = vector.broadcast %cst_4 : f32 to vector<8x16xf32>
    %14 = arith.mulf %13, %12 : vector<8x16xf32>
    %15 = math.exp %14 : vector<8x16xf32>
    %cst_5 = arith.constant 0.000000e+00 : f32
    %16 = vector.broadcast %cst_5 : f32 to vector<8x16xf32>
    %17 = arith.select %10, %15, %16 : vector<8x16xi1>, vector<8x16xf32>
    %cst_6 = arith.constant dense<0.000000e+00> : vector<8xf32>
    %18 = vector.multi_reduction <add>, %17, %cst_6 [1] : vector<8x16xf32> to vector<8xf32>
    %19 = vector.shape_cast %18 : vector<8xf32> to vector<8x1xf32>
    %c0_7 = arith.constant 0 : index
    %c0_8 = arith.constant 0 : index
    %20 = vector.load %arg3[%c0_7, %c0_8] : memref<8x1xi32, #tpu.memory_space<vmem>>, vector<8x1xi32>
    %c0_9 = arith.constant 0 : index
    %c0_10 = arith.constant 0 : index
    %21 = vector.load %arg4[%c0_9, %c0_10] : memref<1x16xi32, #tpu.memory_space<vmem>>, vector<1x16xi32>
    %22 = vector.broadcast %20 : vector<8x1xi32> to vector<8x16xi32>
    %23 = vector.broadcast %21 : vector<1x16xi32> to vector<8x16xi32>
    %24 = arith.cmpi eq, %22, %23 : vector<8x16xi32>
    %25 = arith.andi %10, %24 : vector<8x16xi1>
    %cst_11 = arith.constant 0.000000e+00 : f32
    %26 = vector.broadcast %cst_11 : f32 to vector<8x16xf32>
    %27 = arith.select %25, %2, %26 : vector<8x16xi1>, vector<8x16xf32>
    %cst_12 = arith.constant dense<0.000000e+00> : vector<8xf32>
    %28 = vector.multi_reduction <add>, %27, %cst_12 [1] : vector<8x16xf32> to vector<8xf32>
    %29 = vector.shape_cast %28 : vector<8xf32> to vector<8x1xf32>
    %c0_13 = arith.constant 0 : index
    %c0_14 = arith.constant 0 : index
    %30 = vector.load %arg5[%c0_13, %c0_14] : memref<8x1xf32, #tpu.memory_space<vmem>>, vector<8x1xf32>
    %cst_15 = arith.constant 1.000000e+00 : f32
    %31 = vector.broadcast %cst_15 : f32 to vector<8x1xf32>
    %32 = arith.maximumf %30, %31 : vector<8x1xf32>
    %33 = arith.divf %29, %32 : vector<8x1xf32>
    %34 = arith.subf %33, %4 : vector<8x1xf32>
    %cst_16 = arith.constant 14.2857141 : f32
    %35 = vector.broadcast %cst_16 : f32 to vector<8x1xf32>
    %36 = arith.mulf %35, %34 : vector<8x1xf32>
    %37 = math.log %19 : vector<8x1xf32>
    %38 = arith.subf %36, %37 : vector<8x1xf32>
    %cst_17 = arith.constant 0.000000e+00 : f32
    %39 = vector.broadcast %cst_17 : f32 to vector<8x1xf32>
    %40 = arith.cmpf ogt, %30, %39 : vector<8x1xf32>
    %cst_18 = arith.constant 0.000000e+00 : f32
    %41 = vector.broadcast %cst_18 : f32 to vector<8x1xf32>
    %42 = arith.select %40, %38, %41 : vector<8x1xi1>, vector<8x1xf32>
    %cst_19 = arith.constant -1.000000e+00 : f32
    %43 = vector.broadcast %cst_19 : f32 to vector<8x1xf32>
    %44 = arith.mulf %43, %42 : vector<8x1xf32>
    %c0_20 = arith.constant 0 : index
    %c0_21 = arith.constant 0 : index
    %45 = vector.load %arg6[%c0_20, %c0_21] : memref<8x1xf32, #tpu.memory_space<vmem>>, vector<8x1xf32>
    tpu.vector_store %arg6[%c0_20, %c0_21], %44 {strides = array<i32>} : memref<8x1xf32, #tpu.memory_space<vmem>>, vector<8x1xf32>,
    return
  }
  func.func @transform_0(%arg0: i32) -> (i32, i32) {
    %c0_i32 = arith.constant 0 : i32
    %c0_i32_0 = arith.constant 0 : i32
    return %arg0, %c0_i32 : i32, i32
  }
  func.func @transform_1(%arg0: i32) -> (i32, i32) {
    %c0_i32 = arith.constant 0 : i32
    %c0_i32_0 = arith.constant 0 : i32
    %c0_i32_1 = arith.constant 0 : i32
    return %c0_i32, %c0_i32_0 : i32, i32
  }
  func.func @transform_2(%arg0: i32) -> (i32, i32) {
    %c0_i32 = arith.constant 0 : i32
    %c0_i32_0 = arith.constant 0 : i32
    return %arg0, %c0_i32 : i32, i32
  }
  func.func @transform_3(%arg0: i32) -> (i32, i32) {
    %c0_i32 = arith.constant 0 : i32
    %c0_i32_0 = arith.constant 0 : i32
    %c0_i32_1 = arith.constant 0 : i32
    return %c0_i32, %c0_i32_0 : i32, i32
  }
  func.func @transform_4(%arg0: i32) -> (i32, i32) {
    %c0_i32 = arith.constant 0 : i32
    %c0_i32_0 = arith.constant 0 : i32
    return %arg0, %c0_i32 : i32, i32
  }
  func.func @transform_5(%arg0: i32) -> (i32, i32) {
    %c0_i32 = arith.constant 0 : i32
    %c0_i32_0 = arith.constant 0 : i32
    return %arg0, %c0_i32 : i32, i32
  }
}

</mosaic_0001>

<bundles_post_ra>
// kernel: tpu_custom_call.1
= control target key start
LH: loop header
LB: loop body
LE: loop exit
PB: predicated region body
PF: predicated region fallthrough
CT: control target
= control target key end

     0   :  { %s591_s18 = smov 0   ;;  %s679_s0 = inlined_call_operand.vmem [shape: f32[16,128], index: 0, kind: input, shape index: {}]   ;;  %s680_s1 = inlined_call_operand.vmem [shape: f32[128,16], index: 1, kind: input, shape index: {}]   ;;  %s681_s2 = inlined_call_operand.vmem [shape: s32[16,1], index: 2, kind: input, shape index: {}]   ;;  %s682_s3 = inlined_call_operand.vmem [shape: s32[1,16], index: 3, kind: input, shape index: {}]   ;;  %s683_s4 = inlined_call_operand.vmem [shape: f32[16,1], index: 4, kind: input, shape index: {}]   ;;  %s684_s5 = inlined_call_operand.vmem [shape: f32[16,1], index: 5, kind: output, shape index: {}]  }
   0x1 LB: > { %s597_s19 = sadd.s32 4294967295, %s556_s18   ;;  %p471_p0 = scmp.ge.s32.totalorder %s556_s18, 1  ;;  %s556_s18 = sphi %s591_s18, %s15_s18  }
   0x2   : > { %p204_p1 = scmp.lt.s32.totalorder %s556_s18, 3 }
   0x4   : > { %p205_p2 = pnand %p471_p0, %p204_p1 }
   0x5   : > { %p238_p3 = scmp.lt.s32.totalorder (!%p205_p2), %s597_s19, 1  ;;  %s476_s12 = sshll.u32 (!%p205_p2), %s597_s19, 3 }
   0x6   : > { %208 = sbr.rel (%p205_p2) target bundleno = 558 (0x22e), region = 40 }
   0xb   : > { %v270_v0 = vld [vmem:[%s680_s1 + $0x78] sm:$0xff]  ;;  %v558_v1 = vmov 0.0   ;;  %v269_v2 = vld [vmem:[%s680_s1 + $0x70] sm:$0xff]  ;;  %vm559_vm0 = vmmov 0   ;;  %v268_v3 = vld [vmem:[%s680_s1 + $0x68] sm:$0xff]  ;;  %s239_s17 = scalar_select %p238_p3, %s597_s19, 1  ;;  %v346_v27 = vlaneseq  ;;  %v348_v29 = vstv %s476_s12 }
   0xc   : > { %497 = vmatprep.subr.mxu0 %v558_v1  ;;  %529 = vmatprep.mubr.msk.f32.mxu0 %vm559_vm0, %v558_v1  ;;  %v267_v4 = vld [vmem:[%s680_s1 + $0x60] sm:$0xff]  ;;  %v266_v5 = vld [vmem:[%s680_s1 + $0x58] sm:$0xff]  ;;  %v265_v6 = vld [vmem:[%s680_s1 + $0x50] sm:$0xff]  ;;  %v560_v18 = vmov 0   ;;  %vm341_vm1 = vcmask 130048   ;;  %vm388_vm6 = vcmask 7168  }
   0xd   : > { %498 = vmatpush3.msra.mxu0 %v270_v0  ;;  %v264_v7 = vld [vmem:[%s680_s1 + $0x48] sm:$0xff]  ;;  %v263_v8 = vld [vmem:[%s680_s1 + $0x40] sm:$0xff]  ;;  %v262_v9 = vld [vmem:[%s680_s1 + $0x38] sm:$0xff]  ;;  %s642_s24 = sshll.u32 %s239_s17, 3  ;;  %543 = vset.pattern.permute.xlu0 %v560_v18  ;;  %v347_v28 = vshrl.u32 %v346_v27, 7  ;;  %v351_v31 = vand.u32 127, %v346_v27 }
   0xe   : > { %499 = vmatprep.subr.mxu0 %v558_v1  ;;  %v261_v10 = vld [vmem:[%s680_s1 + $0x30] sm:$0xff]  ;;  %v260_v11 = vld [vmem:[%s680_s1 + $0x28] sm:$0xff]  ;;  %v259_v12 = vld [vmem:[%s680_s1 + $0x20] sm:$0xff]  ;;  %s241_s6 = scalar_lea.vmem %s679_s0, %s642_s24  ;;  %s245_s11 = scalar_lea.vmem %s681_s2, %s642_s24 }
   0xf   : > { %500 = vmatpush3.msra.mxu0 %v269_v2  ;;  %v258_v13 = vld [vmem:[%s680_s1 + $0x18] sm:$0xff]  ;;  %v257_v14 = vld [vmem:[%s680_s1 + $0x10] sm:$0xff]  ;;  %v256_v15 = vld [vmem:[%s680_s1 + $0x8] sm:$0xff]  ;;  %v349_v30 = vadd.s32 %v348_v29, %v347_v28  ;;  %s249_s16 = scalar_lea.vmem %s683_s4, %s642_s24  ;;  %s253_s21 = scalar_lea.vmem %s684_s5, %s642_s24 }
  0x10   : > { %501 = vmatprep.subr.mxu0 %v558_v1  ;;  %v255_v16 = vld [vmem:[%s680_s1] sm:$0xff] }
  0x11   : > { %502 = vmatpush3.msra.mxu0 %v268_v3  ;;  %v254_v17 = vld [vmem:[%s241_s6] sm:$0xff]  ;;  %vm352_vm2 = vcmp.ne.s32.totalorder %v349_v30, %v351_v31 }
  0x12   : > { %503 = vmatprep.subr.mxu0 %v558_v1  ;;  %v361_v22 = vld [vmem:[%s245_s11] sm:$0xff] }
  0x13   : > { %504 = vmatpush3.msra.mxu0 %v267_v4  ;;  %v477_v32 = vld [vmem:[%s682_s3] ss:$0 sm:$0xff] }
  0x14   : > { %505 = vmatprep.subr.mxu0 %v558_v1  ;;  %v376_v39 = vld [vmem:[%s249_s16] sm:$0xff] }
  0x15   : > { %506 = vmatpush3.msra.mxu0 %v266_v5  ;;  %v377_v40 = vmax.f32 %v376_v39, 1.0  ;;  %vm385_vm5 = vcmp.gt.f32.partialorder %v376_v39, 0.0 }
  0x16   : > { %507 = vmatprep.subr.mxu0 %v558_v1 }
  0x17   : > { %508 = vmatpush3.msra.mxu0 %v265_v6 }
  0x18   : > { %509 = vmatprep.subr.mxu0 %v558_v1 }
  0x19   : > { %510 = vmatpush3.msra.mxu0 %v264_v7 }
  0x1a   : > { %511 = vmatprep.subr.mxu0 %v558_v1 }
  0x1b   : > { %512 = vmatpush3.msra.mxu0 %v263_v8 }
  0x1c   : > { %513 = vmatprep.subr.mxu0 %v558_v1 }
  0x1d   : > { %514 = vmatpush3.msra.mxu0 %v262_v9 }
  0x1e   : > { %515 = vmatprep.subr.mxu0 %v558_v1 }
  0x1f   : > { %516 = vmatpush3.msra.mxu0 %v261_v10 }
  0x20   : > { %517 = vmatprep.subr.mxu0 %v558_v1 }
  0x21   : > { %518 = vmatpush3.msra.mxu0 %v260_v11 }
  0x22   : > { %519 = vmatprep.subr.mxu0 %v558_v1 }
  0x23   : > { %520 = vmatpush3.msra.mxu0 %v259_v12 }
  0x24   : > { %521 = vmatprep.subr.mxu0 %v558_v1 }
  0x25   : > { %522 = vmatpush3.msra.mxu0 %v258_v13 }
  0x26   : > { %523 = vmatprep.subr.mxu0 %v558_v1 }
  0x27   : > { %524 = vmatpush3.msra.mxu0 %v257_v14 }
  0x28   : > { %525 = vmatprep.subr.mxu0 %v558_v1 }
  0x29   : > { %526 = vmatpush3.msra.mxu0 %v256_v15 }
  0x2a   : > { %527 = vmatprep.subr.mxu0 %v558_v1 }
  0x2b   : > { %528 = vmatpush3.msra.mxu0 %v255_v16 }
  0x2c   : > { %530 = vmatmul.mubr.f32.vlgmr.msra.gmra.mxu0 %v254_v17 }
  0xec   : > { %v337_v19 = vpop.f32.mrf.mxu0 }
  0xed   : > { %v342_v20 = vsel %vm341_vm1, %v337_v19, -inf }
  0xee   : > { %343 = vmax.xlane.f32.xlu0 %v342_v20  ;;  %v531_v21 = vpop.f32.mrf.mxu0 }
 0x104   : > { %364 = vperm.xlu0 %543, %v361_v22  }
 0x177   : > { %v344_v23 = vpop.xlane.xlu0 %343 }
 0x178   : > { %v353_v24 = vsub.f32 %v337_v19, %v344_v23 }
 0x17a   : > { %v354_v25 = vmul.f32 14.285714, %v353_v24 }
 0x17c   : > { %v355_v26 = vmul.f32 1.442695, %v354_v25 }
 0x17e   : > { %544 = vpow2.f32 %v355_v26 }
 0x17f   : > { %v365_v33 = vpop.permute.xlu0 %364  ;;  %546 = vrcp.f32 %v377_v40 }
 0x180   : > { %vm370_vm3 = vcmp.eq.s32.totalorder %v365_v33, %v477_v32 }
 0x181   : > { %vm371_vm4 = vmand %vm352_vm2, %vm370_vm3 }
 0x182   : > { %v372_v37 = vsel %vm371_vm4, %v337_v19, 0.0 }
 0x183   : > { %v373_v38 = vsel %vm341_vm1, %v372_v37, 0.0 }
 0x18b   : > { %v545_v34 = vpop.eup %544 }
 0x18c   : > { %v357_v35 = vsel %vm352_vm2, %v545_v34, 0.0  ;;  %v547_v42 = vpop.eup %546 }
 0x18d   : > { %v358_v36 = vsel %vm341_vm1, %v357_v35, 0.0 }
 0x18e   : > { %359 = vadd.xlane.f32.xlu1 %v358_v36 }
 0x192   : > { %374 = vadd.xlane.f32.xlu1 %v373_v38 }
 0x217   : > { %v360_v41 = vpop.xlane.xlu1 %359 }
 0x218   : > { %548 = vlog2.f32 %v360_v41 }
 0x21b   : > { %v375_v43 = vpop.xlane.xlu1 %374 }
 0x21c   : > { %v379_v44 = vmul.f32 %v547_v42, %v375_v43 }
 0x21e   : > { %v380_v45 = vsub.f32 %v379_v44, %v344_v23 }
 0x220   : > { %v381_v48 = vmul.f32 14.285714, %v380_v45 }
 0x225   : > { %v549_v46 = vpop.eup %548 }
 0x226   : > { %v383_v47 = vmul.f32 0.6931472, %v549_v46 }
 0x228   : > { %v384_v49 = vsub.f32 %v381_v48, %v383_v47 }
 0x22a   : > { %v386_v50 = vsel %vm385_vm5, %v384_v49, 0.0 }
 0x22b   : > { %v387_v51 = vmul.f32 -1.0, %v386_v50 }
 0x22d   : > { %389 = vst.msk [vmem:[%s253_s21] sm:$0xff] %vm388_vm6, %v387_v51 }
 0x22e PF: > { %s15_s18 = sadd.s32 1, %s556_s18  }
 0x22f   : > { %p12_p4 = scmp.ge.s32.totalorder %s15_s18, 4  }
 0x231   :  { %14 = sbr.rel (!%p12_p4) target bundleno = 1 (0x1), region = 76 }

// kernel: tpu_custom_call.1
= control target key start
LH: loop header
LB: loop body
LE: loop exit
PB: predicated region body
PF: predicated region fallthrough
CT: control target
= control target key end

     0   :  { %s591_s18 = smov 0   ;;  %s679_s0 = inlined_call_operand.vmem [shape: f32[16,128], index: 0, kind: input, shape index: {}]   ;;  %s680_s1 = inlined_call_operand.vmem [shape: f32[128,16], index: 1, kind: input, shape index: {}]   ;;  %s681_s2 = inlined_call_operand.vmem [shape: s32[16,1], index: 2, kind: input, shape index: {}]   ;;  %s682_s3 = inlined_call_operand.vmem [shape: s32[1,16], index: 3, kind: input, shape index: {}]   ;;  %s683_s4 = inlined_call_operand.vmem [shape: f32[16,1], index: 4, kind: input, shape index: {}]   ;;  %s684_s5 = inlined_call_operand.vmem [shape: f32[16,1], index: 5, kind: output, shape index: {}]  }
   0x1 LB: > { %s597_s19 = sadd.s32 4294967295, %s556_s18   ;;  %p471_p0 = scmp.ge.s32.totalorder %s556_s18, 1  ;;  %s556_s18 = sphi %s591_s18, %s15_s18  }
   0x2   : > { %p204_p1 = scmp.lt.s32.totalorder %s556_s18, 3 }
   0x4   : > { %p205_p2 = pnand %p471_p0, %p204_p1 }
   0x5   : > { %p238_p3 = scmp.lt.s32.totalorder (!%p205_p2), %s597_s19, 1  ;;  %s476_s12 = sshll.u32 (!%p205_p2), %s597_s19, 3 }
   0x6   : > { %208 = sbr.rel (%p205_p2) target bundleno = 558 (0x22e), region = 40 }
   0xb   : > { %v270_v0 = vld [vmem:[%s680_s1 + $0x78] sm:$0xff]  ;;  %v558_v1 = vmov 0.0   ;;  %v269_v2 = vld [vmem:[%s680_s1 + $0x70] sm:$0xff]  ;;  %vm559_vm0 = vmmov 0   ;;  %v268_v3 = vld [vmem:[%s680_s1 + $0x68] sm:$0xff]  ;;  %s239_s17 = scalar_select %p238_p3, %s597_s19, 1  ;;  %v346_v27 = vlaneseq  ;;  %v348_v29 = vstv %s476_s12 }
   0xc   : > { %497 = vmatprep.subr.mxu0 %v558_v1  ;;  %529 = vmatprep.mubr.msk.f32.mxu0 %vm559_vm0, %v558_v1  ;;  %v267_v4 = vld [vmem:[%s680_s1 + $0x60] sm:$0xff]  ;;  %v266_v5 = vld [vmem:[%s680_s1 + $0x58] sm:$0xff]  ;;  %v265_v6 = vld [vmem:[%s680_s1 + $0x50] sm:$0xff]  ;;  %v560_v18 = vmov 0   ;;  %vm341_vm1 = vcmask 130048   ;;  %vm388_vm6 = vcmask 7168  }
   0xd   : > { %498 = vmatpush3.msra.mxu0 %v270_v0  ;;  %v264_v7 = vld [vmem:[%s680_s1 + $0x48] sm:$0xff]  ;;  %v263_v8 = vld [vmem:[%s680_s1 + $0x40] sm:$0xff]  ;;  %v262_v9 = vld [vmem:[%s680_s1 + $0x38] sm:$0xff]  ;;  %s642_s24 = sshll.u32 %s239_s17, 3  ;;  %543 = vset.pattern.permute.xlu0 %v560_v18  ;;  %v347_v28 = vshrl.u32 %v346_v27, 7  ;;  %v351_v31 = vand.u32 127, %v346_v27 }
   0xe   : > { %499 = vmatprep.subr.mxu0 %v558_v1  ;;  %v261_v10 = vld [vmem:[%s680_s1 + $0x30] sm:$0xff]  ;;  %v260_v11 = vld [vmem:[%s680_s1 + $0x28] sm:$0xff]  ;;  %v259_v12 = vld [vmem:[%s680_s1 + $0x20] sm:$0xff]  ;;  %s241_s6 = scalar_lea.vmem %s679_s0, %s642_s24  ;;  %s245_s11 = scalar_lea.vmem %s681_s2, %s642_s24 }
   0xf   : > { %500 = vmatpush3.msra.mxu0 %v269_v2  ;;  %v258_v13 = vld [vmem:[%s680_s1 + $0x18] sm:$0xff]  ;;  %v257_v14 = vld [vmem:[%s680_s1 + $0x10] sm:$0xff]  ;;  %v256_v15 = vld [vmem:[%s680_s1 + $0x8] sm:$0xff]  ;;  %v349_v30 = vadd.s32 %v348_v29, %v347_v28  ;;  %s249_s16 = scalar_lea.vmem %s683_s4, %s642_s24  ;;  %s253_s21 = scalar_lea.vmem %s684_s5, %s642_s24 }
  0x10   : > { %501 = vmatprep.subr.mxu0 %v558_v1  ;;  %v255_v16 = vld [vmem:[%s680_s1] sm:$0xff] }
  0x11   : > { %502 = vmatpush3.msra.mxu0 %v268_v3  ;;  %v254_v17 = vld [vmem:[%s241_s6] sm:$0xff]  ;;  %vm352_vm2 = vcmp.ne.s32.totalorder %v349_v30, %v351_v31 }
  0x12   : > { %503 = vmatprep.subr.mxu0 %v558_v1  ;;  %v361_v22 = vld [vmem:[%s245_s11] sm:$0xff] }
  0x13   : > { %504 = vmatpush3.msra.mxu0 %v267_v4  ;;  %v477_v32 = vld [vmem:[%s682_s3] ss:$0 sm:$0xff] }
  0x14   : > { %505 = vmatprep.subr.mxu0 %v558_v1  ;;  %v376_v39 = vld [vmem:[%s249_s16] sm:$0xff] }
  0x15   : > { %506 = vmatpush3.msra.mxu0 %v266_v5  ;;  %v377_v40 = vmax.f32 %v376_v39, 1.0  ;;  %vm385_vm5 = vcmp.gt.f32.partialorder %v376_v39, 0.0 }
  0x16   : > { %507 = vmatprep.subr.mxu0 %v558_v1 }
  0x17   : > { %508 = vmatpush3.msra.mxu0 %v265_v6 }
  0x18   : > { %509 = vmatprep.subr.mxu0 %v558_v1 }
  0x19   : > { %510 = vmatpush3.msra.mxu0 %v264_v7 }
  0x1a   : > { %511 = vmatprep.subr.mxu0 %v558_v1 }
  0x1b   : > { %512 = vmatpush3.msra.mxu0 %v263_v8 }
  0x1c   : > { %513 = vmatprep.subr.mxu0 %v558_v1 }
  0x1d   : > { %514 = vmatpush3.msra.mxu0 %v262_v9 }
  0x1e   : > { %515 = vmatprep.subr.mxu0 %v558_v1 }
  0x1f   : > { %516 = vmatpush3.msra.mxu0 %v261_v10 }
  0x20   : > { %517 = vmatprep.subr.mxu0 %v558_v1 }
  0x21   : > { %518 = vmatpush3.msra.mxu0 %v260_v11 }
  0x22   : > { %519 = vmatprep.subr.mxu0 %v558_v1 }
  0x23   : > { %520 = vmatpush3.msra.mxu0 %v259_v12 }
  0x24   : > { %521 = vmatprep.subr.mxu0 %v558_v1 }
  0x25   : > { %522 = vmatpush3.msra.mxu0 %v258_v13 }
  0x26   : > { %523 = vmatprep.subr.mxu0 %v558_v1 }
  0x27   : > { %524 = vmatpush3.msra.mxu0 %v257_v14 }
  0x28   : > { %525 = vmatprep.subr.mxu0 %v558_v1 }
  0x29   : > { %526 = vmatpush3.msra.mxu0 %v256_v15 }
  0x2a   : > { %527 = vmatprep.subr.mxu0 %v558_v1 }
  0x2b   : > { %528 = vmatpush3.msra.mxu0 %v255_v16 }
  0x2c   : > { %530 = vmatmul.mubr.f32.vlgmr.msra.gmra.mxu0 %v254_v17 }
  0xec   : > { %v337_v19 = vpop.f32.mrf.mxu0 }
  0xed   : > { %v342_v20 = vsel %vm341_vm1, %v337_v19, -inf }
  0xee   : > { %343 = vmax.xlane.f32.xlu0 %v342_v20  ;;  %v531_v21 = vpop.f32.mrf.mxu0 }
 0x104   : > { %364 = vperm.xlu0 %543, %v361_v22  }
 0x177   : > { %v344_v23 = vpop.xlane.xlu0 %343 }
 0x178   : > { %v353_v24 = vsub.f32 %v337_v19, %v344_v23 }
 0x17a   : > { %v354_v25 = vmul.f32 14.285714, %v353_v24 }
 0x17c   : > { %v355_v26 = vmul.f32 1.442695, %v354_v25 }
 0x17e   : > { %544 = vpow2.f32 %v355_v26 }
 0x17f   : > { %v365_v33 = vpop.permute.xlu0 %364  ;;  %546 = vrcp.f32 %v377_v40 }
 0x180   : > { %vm370_vm3 = vcmp.eq.s32.totalorder %v365_v33, %v477_v32 }
 0x181   : > { %vm371_vm4 = vmand %vm352_vm2, %vm370_vm3 }
 0x182   : > { %v372_v37 = vsel %vm371_vm4, %v337_v19, 0.0 }
 0x183   : > { %v373_v38 = vsel %vm341_vm1, %v372_v37, 0.0 }
 0x18b   : > { %v545_v34 = vpop.eup %544 }
 0x18c   : > { %v357_v35 = vsel %vm352_vm2, %v545_v34, 0.0  ;;  %v547_v42 = vpop.eup %546 }
 0x18d   : > { %v358_v36 = vsel %vm341_vm1, %v357_v35, 0.0 }
 0x18e   : > { %359 = vadd.xlane.f32.xlu1 %v358_v36 }
 0x192   : > { %374 = vadd.xlane.f32.xlu1 %v373_v38 }
 0x217   : > { %v360_v41 = vpop.xlane.xlu1 %359 }
 0x218   : > { %548 = vlog2.f32 %v360_v41 }
 0x21b   : > { %v375_v43 = vpop.xlane.xlu1 %374 }
 0x21c   : > { %v379_v44 = vmul.f32 %v547_v42, %v375_v43 }
 0x21e   : > { %v380_v45 = vsub.f32 %v379_v44, %v344_v23 }
 0x220   : > { %v381_v48 = vmul.f32 14.285714, %v380_v45 }
 0x225   : > { %v549_v46 = vpop.eup %548 }
 0x226   : > { %v383_v47 = vmul.f32 0.6931472, %v549_v46 }
 0x228   : > { %v384_v49 = vsub.f32 %v381_v48, %v383_v47 }
 0x22a   : > { %v386_v50 = vsel %vm385_vm5, %v384_v49, 0.0 }
 0x22b   : > { %v387_v51 = vmul.f32 -1.0, %v386_v50 }
 0x22d   : > { %389 = vst.msk [vmem:[%s253_s21] sm:$0xff] %vm388_vm6, %v387_v51 }
 0x22e PF: > { %s15_s18 = sadd.s32 1, %s556_s18  }
 0x22f   : > { %p12_p4 = scmp.ge.s32.totalorder %s15_s18, 4  }
 0x231   :  { %14 = sbr.rel (!%p12_p4) target bundleno = 1 (0x1), region = 76 }

</bundles_post_ra>
